<compile_context>
chip_gen: v7x
topology: tpu7x:2x2x1
jax: 0.10.0
libtpu: 0.0.40
codegen_flags: <defaults>
</compile_context>

<pallas_src>
import numpy as np
import jax
import jax.numpy as jnp
from jax import lax
from jax.experimental import pallas as pl
from jax.experimental.pallas import tpu as pltpu


def _row_tile(n, max_tile=512):
    """Largest row tile <= max_tile that divides n (multiple of 8 preferred)."""
    for t in range(min(n, max_tile), 0, -1):
        if n % t == 0 and (t % 8 == 0 or t == n):
            return t
    return n


# ---------------------------------------------------------------------------
# Kernel 1: single-pass batch moments.  Accumulates sum(x) and x^T x over a
# row-tiled grid.  Outputs use a constant index_map => they stay resident in
# VMEM across the whole reduction and are written back to HBM once at the end.
# ---------------------------------------------------------------------------
def _moments_kernel(x_ref, sum_ref, xtx_ref):
    @pl.when(pl.program_id(0) == 0)
    def _init():
        sum_ref[...] = jnp.zeros_like(sum_ref)
        xtx_ref[...] = jnp.zeros_like(xtx_ref)

    x = x_ref[...]                                      # (TILE_N, D), native dtype
    sum_ref[...] += jnp.sum(x.astype(jnp.float32), axis=0, keepdims=True)
    # x^T x without materialising a (D, TILE_N) transpose: contract the leading
    # (row) axis directly on the MXU, accumulate in f32.
    xtx_ref[...] += lax.dot_general(
        x, x,
        dimension_numbers=(((0,), (0,)), ((), ())),
        preferred_element_type=jnp.float32)


def batch_moments(x, max_tile=512):
    """Returns (sum(x, axis=0) as (1, D) f32, x^T x as (D, D) f32)."""
    n, d = x.shape
    tn = _row_tile(n, max_tile)
    return pl.pallas_call(
        _moments_kernel,
        grid=(n // tn,),
        in_specs=[pl.BlockSpec((tn, d), lambda i: (i, 0))],
        out_specs=(pl.BlockSpec((1, d), lambda i: (0, 0)),
                   pl.BlockSpec((d, d), lambda i: (0, 0))),
        out_shape=(jax.ShapeDtypeStruct((1, d), jnp.float32),
                   jax.ShapeDtypeStruct((d, d), jnp.float32)),
        compiler_params=pltpu.CompilerParams(
            dimension_semantics=("arbitrary",)),    # reduction over row tiles
    )(x)


# ---------------------------------------------------------------------------
# Kernel 2: whitening application.  out = (x - mean) @ W = x @ W - mean @ W.
# mean @ W is a precomputed (1, D) f32 row, so the centered copy of x never
# exists in HBM and x stays in its native dtype on the MXU.
# ---------------------------------------------------------------------------
def _apply_kernel(x_ref, mw_ref, w_ref, out_ref):
    xw = jnp.dot(x_ref[...], w_ref[...], preferred_element_type=jnp.float32)
    out_ref[...] = (xw - mw_ref[...]).astype(out_ref.dtype)


def whitening_apply(x, mean_w, w, max_tile=512):
    n, d = x.shape
    tn = _row_tile(n, max_tile)
    return pl.pallas_call(
        _apply_kernel,
        grid=(n // tn,),
        in_specs=[pl.BlockSpec((tn, d), lambda i: (i, 0)),
                  pl.BlockSpec((1, d), lambda i: (0, 0)),    # mean @ W  (f32)
                  pl.BlockSpec((d, d), lambda i: (0, 0))],   # W, resident
        out_specs=pl.BlockSpec((tn, d), lambda i: (i, 0)),
        out_shape=jax.ShapeDtypeStruct((n, d), x.dtype),
        compiler_params=pltpu.CompilerParams(
            dimension_semantics=("parallel",)),     # rows independent (v7x: 2 TCs)
    )(x, mean_w, w)


# ---------------------------------------------------------------------------
# Module
# ---------------------------------------------------------------------------
class Whitening1d:
    """JAX/Pallas port of the PyTorch Whitening1d module."""

    def __init__(self, num_features, momentum=0.01, eps=1e-5):
        self.num_features = num_features
        self.momentum = momentum
        self.eps = eps
        self.running_mean = jnp.zeros((num_features,), jnp.float32)
        self.running_covariance = jnp.eye(num_features, dtype=jnp.float32)

    def __call__(self, x, training=True):
        n, d = x.shape
        assert d == self.num_features

        if training:
            sum_x, xtx = batch_moments(x)          # Pallas: one pass over x
            nf = jnp.float32(n)
            mean = sum_x / nf                      # (1, D) f32
            # cov = (x-mean)^T (x-mean)/(n-1) == (x^T x - n*mean*mean^T)/(n-1)
            outer = jnp.dot(mean.T, mean, precision=lax.Precision.HIGHEST)
            cov = (xtx - nf * outer) / (nf - 1.0)  # (D, D) f32
            m = self.momentum
            self.running_mean = m * mean[0] + (1.0 - m) * self.running_mean
            self.running_covariance = m * cov + (1.0 - m) * self.running_covariance
        else:
            mean = self.running_mean.reshape(1, d).astype(jnp.float32)
            cov = self.running_covariance

        # eps-regularisation toward identity (after the buffer update, as in torch)
        cov_reg = (1.0 - self.eps) * cov + self.eps * jnp.eye(d, dtype=jnp.float32)

        # TODO(synk): the tiny (D, D) Cholesky + triangular solve has no clean
        # Pallas equivalent; like the PyTorch reference (which calls .cpu()),
        # it is computed host-side in float32 and shipped back as W.
        cov_np = np.asarray(cov_reg, dtype=np.float32)
        chol = np.linalg.cholesky(cov_np)
        w_np = np.linalg.solve(chol, np.eye(d, dtype=np.float32)).T   # (D, D) f32
        w = jnp.asarray(w_np, dtype=jnp.float32)

        # Precompute mean @ W so the apply kernel can fuse the centering.
        mean_w = jnp.dot(mean, w, precision=lax.Precision.HIGHEST)    # (1, D) f32
        return whitening_apply(x, mean_w, w.astype(x.dtype))


# ---------------------------------------------------------------------------
# float64 NumPy reference (gold standard, independent of TPU matmul precision)
# ---------------------------------------------------------------------------
def _reference_f64(x, momentum, eps, running_mean, running_cov):
    x = np.asarray(x, dtype=np.float64)
    n, d = x.shape
    mean = x.mean(axis=0)
    xc = x - mean
    cov = xc.T @ xc / (n - 1)
    new_rm = momentum * mean + (1.0 - momentum) * np.asarray(running_mean, np.float64)
    new_rc = momentum * cov + (1.0 - momentum) * np.asarray(running_cov, np.float64)
    cov_reg = (1.0 - eps) * cov + eps * np.eye(d)
    chol = np.linalg.cholesky(cov_reg)
    w = np.linalg.solve(chol, np.eye(d)).T
    return xc @ w, new_rm, new_rc


if __name__ == "__main__":
    key = jax.random.PRNGKey(0)
    # N >> D keeps the sample covariance well conditioned (the previous demo
    # used N=8 < D=32, making cov nearly singular so the whitening transform
    # amplified f32 rounding far past any sensible tolerance).  D is a
    # multiple of 128 so every block is lane-aligned.
    batch, hidden = 2048, 128
    x = jax.random.normal(key, (batch, hidden), dtype=jnp.float32)

    mod = Whitening1d(hidden, momentum=0.01, eps=1e-5)
    rm0, rc0 = mod.running_mean, mod.running_covariance

    y = jax.block_until_ready(mod(x, training=True))
    assert y.shape == (batch, hidden) and y.dtype == x.dtype

    y_ref, rm_ref, rc_ref = _reference_f64(x, 0.01, 1e-5, rm0, rc0)

    # Buffer checks validate the stats kernel tightly (EMA is a linear blend).
    assert np.allclose(np.asarray(mod.running_mean), rm_ref,
                       atol=1e-4, rtol=1e-4), "running_mean mismatch"
    assert np.allclose(np.asarray(mod.running_covariance), rc_ref,
                       atol=1e-4, rtol=1e-4), "running_covariance mismatch"
    # End-to-end output vs float64 reference: the whole pipeline is f32 and the
    # whitening transform amplifies covariance error by cond(cov), so compare
    # with a correspondingly relaxed tolerance (structural bugs show up as O(1)).
    assert np.allclose(np.asarray(y), y_ref, atol=2e-2, rtol=2e-2), \
        "whitened output mismatch vs float64 reference"

    print("KERNEL_OK")
</pallas_src>

<mosaic_0001>
module attributes {stable_mosaic.version = 11 : i64} {
  func.func @_moments_kernel(%arg0: i32, %arg1: memref<512x128xf32, #tpu.memory_space<vmem>>, %arg2: memref<1x128xf32, #tpu.memory_space<vmem>>, %arg3: memref<128x128xf32, #tpu.memory_space<vmem>>) attributes {dimension_semantics = [#tpu.dimension_semantics<arbitrary>], iteration_bounds = array<i64: 4>, scalar_prefetch = 0 : i64, scratch_operands = 0 : i64, tpu.core_type = #tpu.core_type<tc>, window_params = [{transform_indices = @transform_0, window_bounds = array<i64: 512, 128>}, {pipeline_mode = #tpu.pipeline_mode<synchronous>, transform_indices = @transform_1, window_bounds = array<i64: 1, 128>}, {pipeline_mode = #tpu.pipeline_mode<synchronous>, transform_indices = @transform_2, window_bounds = array<i64: 128, 128>}]} {
    %c0_i32 = arith.constant 0 : i32
    %0 = arith.cmpi eq, %arg0, %c0_i32 : i32
    %1 = arith.extui %0 : i1 to i32
    %c0_i32_0 = arith.constant 0 : i32
    %2 = arith.cmpi ne, %1, %c0_i32_0 : i32
    scf.if %2 {
      %cst_11 = arith.constant 0.000000e+00 : f32
      %13 = vector.broadcast %cst_11 : f32 to vector<1x128xf32>
      %c0_12 = arith.constant 0 : index
      %c0_13 = arith.constant 0 : index
      %14 = vector.load %arg2[%c0_12, %c0_13] : memref<1x128xf32, #tpu.memory_space<vmem>>, vector<1x128xf32>
      tpu.vector_store %arg2[%c0_12, %c0_13], %13 {strides = array<i32>} : memref<1x128xf32, #tpu.memory_space<vmem>>, vector<1x128xf32>,
      %cst_14 = arith.constant 0.000000e+00 : f32
      %15 = vector.broadcast %cst_14 : f32 to vector<128x128xf32>
      %c0_15 = arith.constant 0 : index
      %c0_16 = arith.constant 0 : index
      %16 = vector.load %arg3[%c0_15, %c0_16] : memref<128x128xf32, #tpu.memory_space<vmem>>, vector<128x128xf32>
      tpu.vector_store %arg3[%c0_15, %c0_16], %15 {strides = array<i32>} : memref<128x128xf32, #tpu.memory_space<vmem>>, vector<128x128xf32>,
    } else {
    }
    %c0 = arith.constant 0 : index
    %c0_1 = arith.constant 0 : index
    %3 = vector.load %arg1[%c0, %c0_1] : memref<512x128xf32, #tpu.memory_space<vmem>>, vector<512x128xf32>
    %c0_2 = arith.constant 0 : index
    %c0_3 = arith.constant 0 : index
    %4 = vector.load %arg2[%c0_2, %c0_3] : memref<1x128xf32, #tpu.memory_space<vmem>>, vector<1x128xf32>
    %cst = arith.constant dense<0.000000e+00> : vector<128xf32>
    %5 = vector.multi_reduction <add>, %3, %cst [0] : vector<512x128xf32> to vector<128xf32>
    %6 = vector.shape_cast %5 : vector<128xf32> to vector<1x128xf32>
    %7 = arith.addf %4, %6 : vector<1x128xf32>
    %c0_4 = arith.constant 0 : index
    %c0_5 = arith.constant 0 : index
    %8 = vector.load %arg2[%c0_4, %c0_5] : memref<1x128xf32, #tpu.memory_space<vmem>>, vector<1x128xf32>
    tpu.vector_store %arg2[%c0_4, %c0_5], %7 {strides = array<i32>} : memref<1x128xf32, #tpu.memory_space<vmem>>, vector<1x128xf32>,
    %c0_6 = arith.constant 0 : index
    %c0_7 = arith.constant 0 : index
    %9 = vector.load %arg3[%c0_6, %c0_7] : memref<128x128xf32, #tpu.memory_space<vmem>>, vector<128x128xf32>
    %cst_8 = arith.constant dense<0.000000e+00> : vector<128x128xf32>
    %10 = tpu.matmul %3, %3, %cst_8 {dimension_numbers = #tpu.dot_dimension_numbers<[0], [0], [1], [1], [0, 1, 1, 1], [], []>} : vector<512x128xf32>, vector<512x128xf32>, vector<128x128xf32> -> vector<128x128xf32>
    %11 = arith.addf %9, %10 : vector<128x128xf32>
    %c0_9 = arith.constant 0 : index
    %c0_10 = arith.constant 0 : index
    %12 = vector.load %arg3[%c0_9, %c0_10] : memref<128x128xf32, #tpu.memory_space<vmem>>, vector<128x128xf32>
    tpu.vector_store %arg3[%c0_9, %c0_10], %11 {strides = array<i32>} : memref<128x128xf32, #tpu.memory_space<vmem>>, vector<128x128xf32>,
    return
  }
  func.func @transform_0(%arg0: i32) -> (i32, i32) {
    %c0_i32 = arith.constant 0 : i32
    %c0_i32_0 = arith.constant 0 : i32
    return %arg0, %c0_i32 : i32, i32
  }
  func.func @transform_1(%arg0: i32) -> (i32, i32) {
    %c0_i32 = arith.constant 0 : i32
    %c0_i32_0 = arith.constant 0 : i32
    %c0_i32_1 = arith.constant 0 : i32
    return %c0_i32, %c0_i32_0 : i32, i32
  }
  func.func @transform_2(%arg0: i32) -> (i32, i32) {
    %c0_i32 = arith.constant 0 : i32
    %c0_i32_0 = arith.constant 0 : i32
    %c0_i32_1 = arith.constant 0 : i32
    return %c0_i32, %c0_i32_0 : i32, i32
  }
}

</mosaic_0001>

<bundles_post_ra>
// kernel: tpu_custom_call.1
= control target key start
LH: loop header
LB: loop body
LE: loop exit
PB: predicated region body
PF: predicated region fallthrough
CT: control target
= control target key end

     0   :  { %8 = vsyncpa [#allocation3], 0  ;;  %s2038_s0 = inlined_call_operand.hbm [shape: f32[2048,128], index: 0, kind: input, shape index: {}]   ;;  %s2039_s1 = inlined_call_operand.hbm [shape: f32[1,128], index: 1, kind: output, shape index: {0}]   ;;  %s2040_s2 = inlined_call_operand.hbm [shape: f32[128,128], index: 2, kind: output, shape index: {1}]  }
   0x1   :  { %10 = vsyncpa [#allocation3 + $0x1], 0 }
   0x2   :  { %11 = vsyncpa [#allocation4], 0 }
   0x3   :  { %12 = vsyncpa [#allocation7], 0  ;;  %s1525_s9 = smov 0   ;;  %s1527_s10 = smov 0  }
   0x4   :  { %s1529_s11 = smov 0   ;;  %s1531_s12 = smov 0  }
   0x5 LB: > { %s1544_s13 = sadd.s32 4294967295, %s1500_s12   ;;  %s1547_s14 = sadd.s32 1, %s1500_s12   ;;  %s1500_s12 = sphi %s1531_s12, %s2062_s12   ;;  %s1496_s11 = sphi %s1529_s11, %s2061_s11   ;;  %s1492_s10 = sphi %s1527_s10, %s2060_s10   ;;  %s1488_s9 = sphi %s1525_s9, %s2059_s9  }
   0x6   : > { %s22_s15 = ssub.s32 %s1500_s12, %s1547_s14  ;;  %s25_s16 = sadd.s32 1, %s1496_s11 }
   0x7   : > { %p23_p0 = scmp.eq.s32.totalorder %s22_s15, 0  ;;  %p32_p1 = scmp.ne.s32.totalorder %s1496_s11, %s1492_s10 }
   0x8   : > { %p33_p2 = scmp.eq.s32.totalorder %s1500_s12, 0  ;;  %p38_p3 = scmp.ne.s32.totalorder %s1492_s10, %s1488_s9 }
   0x9   : > { %s1557_s17 = scalar_select %p23_p0, %s1496_s11, %s25_s16  }
   0xa   : > { %p34_p4 = por %p33_p2, %p32_p1  ;;  %p39_p5 = scmp.eq.s32.totalorder %s1544_s13, 0 }
   0xb   : > { %p1108_p6 = scmp.lt.s32.totalorder %s1500_s12, 4  ;;  %s104_s19 = sand.u32 1, %s1496_s11  }
   0xc   : > { %p1561_p7 = por %p39_p5, %p38_p3  ;;  %s857_s20 = sshll.u32 %s104_s19, 9 }
   0xd   : > { %s869_s21 = sshll.u32 %s1500_s12, 13  ;;  %s108_s25 = scalar_lea.vmem [#allocation2], %s857_s20 }
   0xe   : > { %s1570_s24 = scalar_lea.hbm %s2038_s0, %s869_s21  ;;  %s115_s26 = sshll.u32 %s108_s25, 4  ;;  %s1572_s26 = int_to_ptr.vmem [resolvable:$true] %s115_s26 }
   0xf   : > { %p1574_p8 = pnand %p1108_p6, %p34_p4  ;;  %s1579_s28 = scalar_lea.sflag [#allocation3], %s104_s19 }
  0x10   : > { %s1376_s29 = scalar_lea.hbm %s1570_s24, 8192  ;;  %s1381_s4 = scalar_lea.hbm %s2038_s0, 32768 }
  0x11   : > { %p1377_p10 = scmp.ne.s32.totalorder %s1570_s24, %s1376_s29  ;;  %p1378_p11 = pneg %p1574_p8 }
  0x12   : > { %p1382_p0 = scmp.lt.u32.totalorder %s1570_s24, %s2038_s0  ;;  %p1383_p1 = scmp.lt.u32.totalorder %s1381_s4, %s1376_s29 }
  0x13   : > { %p1379_p12 = pnand %p1378_p11, %p1377_p10  ;;  %p1385_p3 = scmp.lt.u32.totalorder %s1376_s29, %s1570_s24 }
  0x14   : > { %p1384_p2 = por %p1383_p1, %p1382_p0 }
  0x15   : > { %p1380_p13 = pneg %p1379_p12 }
  0x16   : > { %p1386_p4 = por %p1385_p3, %p1384_p2 }
  0x18   : > { %p1387_p5 = pnand %p1386_p4, %p1380_p13 }
  0x1a   : > { %1390 = shalt.err (!%p1387_p5)
}
  0x1b   : > { %s1391_s7 = scalar_lea.vmem %s1572_s26, 8192  ;;  %s1502_s8 = smov [#allocation2]  }
  0x1c   : > { %p1392_p6 = scmp.ne.s32.totalorder %s1572_s26, %s1391_s7  ;;  %s1396_s9 = sshll.u32 %s1502_s8, 4  ;;  %s1397_s9 = int_to_ptr.vmem [resolvable:$false] %s1396_s9 }
  0x1d   : > { %s1398_s15 = scalar_lea.vmem %s1397_s9, 16384  ;;  %p1399_p9 = scmp.lt.s32.totalorder %s1572_s26, %s1397_s9 }
  0x1e   : > { %p1394_p10 = pnand %p1392_p6, %p1378_p11  ;;  %p1400_p0 = scmp.lt.s32.totalorder %s1398_s15, %s1391_s7 }
  0x20   : > { %p1395_p12 = pneg %p1394_p10  ;;  %p1401_p1 = por %p1400_p0, %p1399_p9 }
  0x22   : > { %p1402_p2 = pnand %p1401_p1, %p1395_p12 }
  0x24   : > { %1405 = shalt.err (!%p1402_p2)
}
  0x25   : > { %s1503_s16 = smov 128   ;;  %s1504_s19 = smov 8  }
  0x26   : > { %1107 = dma.hbm_to_vmem [thread:$0]  (!%p1574_p8), %s1570_s24, 8192, %s1572_s26, %s1579_s28, %s1503_s16, %s1503_s16, %s1504_s19  }
  0x27   : > { %p123_p11 = scmp.lt.s32.totalorder %s1500_s12, 5  ;;  %p2048_p13 = scmp.ge.s32.totalorder %s1500_s12, 1 }
  0x29   : > { %p124_p3 = pnand %p2048_p13, %p123_p11 }
  0x2b   : > { %127 = sbr.rel (%p124_p3) target bundleno = 499 (0x1f3), region = 24 }
  0x32   : > { %s129_s20 = sand.u32 1, %s1492_s10  }
  0x33   : > { %s861_s21 = sshll.u32 %s129_s20, 9  ;;  %s130_s22 = scalar_lea.sflag [#allocation3], %s129_s20 }
  0x34   : > { %s1611_s23 = scalar_lea.vmem [#allocation2], %s861_s21 }
  0x35   : > { %1475 = dma.done.wait (%p1561_p7), %s130_s22, 8192  }
  0x36   : > { %1477 = vsyncadd (%p1561_p7), %s130_s22, 4294959104  ;;  %p862_p9 = scmp.ne.s32.totalorder %s1544_s13, 0 }
  0x37   : > { %v1505_v0 = vmov (!%p862_p9), 0.0  }
  0x38   : > { %153 = sbr.rel (%p862_p9) target bundleno = 65 (0x41), region = 32  ;;  %154 = vst [vmem:[#allocation5] sm:$0x1] (!%p862_p9), %v1505_v0  ;;  %155 = vst [vmem:[#allocation6] sm:$0xff] (!%p862_p9), %v1505_v0 }
  0x39   : > { %156 = vst [vmem:[#allocation6 + $0x8] sm:$0xff] (!%p862_p9), %v1505_v0  ;;  %157 = vst [vmem:[#allocation6 + $0x10] sm:$0xff] (!%p862_p9), %v1505_v0 }
  0x3a   : > { %158 = vst [vmem:[#allocation6 + $0x18] sm:$0xff] (!%p862_p9), %v1505_v0  ;;  %159 = vst [vmem:[#allocation6 + $0x20] sm:$0xff] (!%p862_p9), %v1505_v0 }
  0x3b   : > { %160 = vst [vmem:[#allocation6 + $0x28] sm:$0xff] (!%p862_p9), %v1505_v0  ;;  %161 = vst [vmem:[#allocation6 + $0x30] sm:$0xff] (!%p862_p9), %v1505_v0 }
  0x3c   : > { %162 = vst [vmem:[#allocation6 + $0x38] sm:$0xff] (!%p862_p9), %v1505_v0  ;;  %163 = vst [vmem:[#allocation6 + $0x40] sm:$0xff] (!%p862_p9), %v1505_v0 }
  0x3d   : > { %164 = vst [vmem:[#allocation6 + $0x48] sm:$0xff] (!%p862_p9), %v1505_v0  ;;  %165 = vst [vmem:[#allocation6 + $0x50] sm:$0xff] (!%p862_p9), %v1505_v0 }
  0x3e   : > { %166 = vst [vmem:[#allocation6 + $0x58] sm:$0xff] (!%p862_p9), %v1505_v0  ;;  %167 = vst [vmem:[#allocation6 + $0x60] sm:$0xff] (!%p862_p9), %v1505_v0 }
  0x3f   : > { %168 = vst [vmem:[#allocation6 + $0x68] sm:$0xff] %v1505_v0  ;;  %169 = vst [vmem:[#allocation6 + $0x70] sm:$0xff] %v1505_v0 }
  0x40   : > { %170 = vst [vmem:[#allocation6 + $0x78] sm:$0xff] %v1505_v0 }
  0x41 PF: > { %v1619_v1 = vld [vmem:[%s1611_s23 + $0x80] sm:$0xff]  ;;  %v1631_v6 = vld [vmem:[%s1611_s23 + $0x88] sm:$0xff]  ;;  %v1648_v15 = vld [vmem:[%s1611_s23 + $0x90] sm:$0xff]  ;;  %p1109_p7 = scmp.eq.s32.totalorder %s1544_s13, 3  ;;  %s1506_s12 = smov [#allocation5]  }
  0x42   : > { %v1622_v2 = vld [vmem:[%s1611_s23 + $0x180] sm:$0xff]  ;;  %v1634_v7 = vld [vmem:[%s1611_s23 + $0x188] sm:$0xff]  ;;  %v1030_v11 = vpack.c.bf16 %v1631_v6, %v1619_v1  ;;  %v1654_v19 = vld [vmem:[%s1611_s23 + $0x190] sm:$0xff]  ;;  %s780_s18 = sshll.u32 %s1506_s12, 4  ;;  %s781_s18 = int_to_ptr.vmem [resolvable:$true] %s780_s18 }
  0x43   : > { %v171_v3 = vld [vmem:[%s1611_s23] sm:$0xff]  ;;  %v1152_v4 = vpack.i.bf16 %v1622_v2, %v1619_v1  ;;  %v172_v9 = vld [vmem:[%s1611_s23 + $0x8] sm:$0xff]  ;;  %v1062_v12 = vpack.c.bf16 %v1634_v7, %v1622_v2  ;;  %v1154_v13 = vpack.i.bf16 %v1634_v7, %v1631_v6  ;;  %2049 = vst [vmem:[#allocation11_spill] sm:$0xff] %v1654_v19  ;;  %v173_v20 = vld [vmem:[%s1611_s23 + $0x10] sm:$0xff]  ;;  %v1156_v30 = vpack.i.bf16 %v1654_v19, %v1648_v15  ;;  %s1406_s24 = scalar_lea.vmem %s781_s18, 16  ;;  %s1412_s25 = scalar_lea.vmem %s781_s18, 32 }
  0x44   : > { %v1628_v5 = vld [vmem:[%s1611_s23 + $0x100] sm:$0xff]  ;;  %v1639_v10 = vld [vmem:[%s1611_s23 + $0x108] sm:$0xff]  ;;  %v236_v14 = vadd.f32 %v172_v9, %v171_v3  ;;  %v1032_v16 = vpack.c.bf16 %v172_v9, %v171_v3  ;;  %v1658_v21 = vld [vmem:[%s1611_s23 + $0x98] sm:$0xff]  ;;  %1031 = vmatprep.subr.bf16.mxu0 %v1030_v11  ;;  %p1407_p8 = scmp.ne.s32.totalorder %s781_s18, %s1406_s24  ;;  %p1413_p6 = scmp.lt.s32.totalorder %s781_s18, %s781_s18 }
  0x45   : > { %v1264_v8 = vpack.i.bf16 %v1628_v5, %v171_v3  ;;  %1153 = vxpose.xlu0.b32.start [1/16] %v1152_v4, 128  ;;  %v1064_v17 = vpack.c.bf16 %v1639_v10, %v1628_v5  ;;  %v1266_v18 = vpack.i.bf16 %v1639_v10, %v172_v9  ;;  %v1661_v22 = vld [vmem:[%s1611_s23 + $0x110] sm:$0xff]  ;;  %v1664_v24 = vld [vmem:[%s1611_s23 + $0x198] sm:$0xff]  ;;  %1063 = vmatprep.subr.bf16.mxu1 %v1062_v12  ;;  %v1681_v32 = vld [vmem:[%s1611_s23 + $0xa0] sm:$0xff]  ;;  %p1414_p10 = scmp.lt.s32.totalorder %s1412_s25, %s1406_s24 }
  0x46   : > { %v237_v23 = vadd.f32 %v236_v14, %v173_v20  ;;  %2050 = vst [vmem:[#allocation12_spill] sm:$0xff] %v1664_v24  ;;  %v1667_v25 = vld [vmem:[%s1611_s23 + $0x18] sm:$0xff]  ;;  %1033 = vmatpush3.bf16.msra.mxu0 %v1032_v16  ;;  %v1034_v26 = vpack.c.bf16 %v1658_v21, %v1648_v15  ;;  %v1066_v28 = vpack.c.bf16 %v1664_v24, %v1654_v19  ;;  %v1684_v33 = vld [vmem:[%s1611_s23 + $0x1a0] sm:$0xff]  ;;  %v1687_v34 = vld [vmem:[%s1611_s23 + $0xa8] sm:$0xff]  ;;  %p1408_p4 = pnand %p1407_p8, %p1109_p7 }
  0x47   : > { %1265 = vxpose.xlu1.b32.start [1/16] %v1264_v8, 128  ;;  %v1672_v27 = vld [vmem:[%s1611_s23 + $0x118] sm:$0xff]  ;;  %1065 = vmatpush3.bf16.msra.mxu1 %v1064_v17  ;;  %v1036_v29 = vpack.c.bf16 %v1667_v25, %v173_v20  ;;  %2051 = vst [vmem:[#allocation13_spill] sm:$0xff] %v1684_v33  ;;  %v1268_v36 = vpack.i.bf16 %v1661_v22, %v173_v20  ;;  %v1693_v37 = vld [vmem:[%s1611_s23 + $0x20] sm:$0xff]  ;;  %v1696_v38 = vld [vmem:[%s1611_s23 + $0x1a8] sm:$0xff]  ;;  %p1415_p12 = por %p1414_p10, %p1413_p6 }
  0x48   : > { %v238_v31 = vadd.f32 %v237_v23, %v1667_v25  ;;  %1035 = vmatprep.subr.bf16.mxu0 %v1034_v26  ;;  %v1068_v35 = vpack.c.bf16 %v1672_v27, %v1661_v22  ;;  %2052 = vst [vmem:[#allocation14_spill] sm:$0xff] %v1696_v38  ;;  %v1699_v39 = vld [vmem:[%s1611_s23 + $0x28] sm:$0xff]  ;;  %1067 = vmatprep.subr.bf16.mxu1 %v1066_v28  ;;  %v1704_v41 = vld [vmem:[%s1611_s23 + $0x120] sm:$0xff]  ;;  %v1715_v46 = vld [vmem:[%s1611_s23 + $0xb0] sm:$0xff]  ;;  %p1409_p5 = pneg %p1408_p4 }
  0x49   : > { %1155 = vxpose.xlu0.b32.cont [2/16] %v1154_v13, 128  ;;  %v1038_v40 = vpack.c.bf16 %v1687_v34, %v1681_v32  ;;  %v1708_v43 = vld [vmem:[%s1611_s23 + $0x128] sm:$0xff]  ;;  %v1070_v44 = vpack.c.bf16 %v1696_v38, %v1684_v33  ;;  %v1040_v45 = vpack.c.bf16 %v1699_v39, %v1693_v37  ;;  %v1718_v47 = vld [vmem:[%s1611_s23 + $0xb8] sm:$0xff]  ;;  %v1158_v49 = vpack.i.bf16 %v1664_v24, %v1658_v21  ;;  %v1726_v51 = vld [vmem:[%s1611_s23 + $0x1b0] sm:$0xff] }
  0x4a   : > { %v239_v42 = vadd.f32 %v238_v31, %v1693_v37  ;;  %1037 = vmatpush3.bf16.msra.mxu0 %v1036_v29  ;;  %v1072_v48 = vpack.c.bf16 %v1708_v43, %v1704_v41  ;;  %2053 = vst [vmem:[#allocation15_spill] sm:$0xff] %v1726_v51  ;;  %v1729_v52 = vld [vmem:[%s1611_s23 + $0x1b8] sm:$0xff]  ;;  %v1042_v53 = vpack.c.bf16 %v1718_v47, %v1715_v46  ;;  %v1736_v55 = vld [vmem:[%s1611_s23 + $0x30] sm:$0xff]  ;;  %v1751_v61 = vld [vmem:[%s1611_s23 + $0xc0] sm:$0xff]  ;;  %p1416_p0 = pnand %p1415_p12, %p1409_p5 }
  0x4b   : > { %1267 = vxpose.xlu1.b32.cont [2/16] %v1266_v18, 128  ;;  %1069 = vmatpush3.bf16.msra.mxu1 %v1068_v35  ;;  %v1270_v54 = vpack.i.bf16 %v1672_v27, %v1667_v25  ;;  %v1739_v56 = vld [vmem:[%s1611_s23 + $0x130] sm:$0xff]  ;;  %v1742_v57 = vld [vmem:[%s1611_s23 + $0x38] sm:$0xff]  ;;  %v1074_v58 = vpack.c.bf16 %v1729_v52, %v1726_v51  ;;  %v1754_v62 = vld [vmem:[%s1611_s23 + $0xc8] sm:$0xff]  ;;  %v1160_v9 = vpack.i.bf16 %v1684_v33, %v1681_v32 }
  0x4c   : > { %1039 = vmatprep.subr.bf16.mxu0 %v1038_v40  ;;  %v240_v50 = vadd.f32 %v239_v42, %v1699_v39  ;;  %1071 = vmatprep.subr.bf16.mxu1 %v1070_v44  ;;  %v1748_v60 = vld [vmem:[%s1611_s23 + $0x138] sm:$0xff]  ;;  %v1044_v63 = vpack.c.bf16 %v1742_v57, %v1736_v55  ;;  %v1759_v0 = vld [vmem:[%s1611_s23 + $0x1c0] sm:$0xff]  ;;  %v1762_v3 = vld [vmem:[%s1611_s23 + $0x1c8] sm:$0xff]  ;;  %v1046_v8 = vpack.c.bf16 %v1754_v62, %v1751_v61 }
  0x4d   : > { %1157 = vxpose.xlu0.b32.cont [3/16] %v1156_v30, 128  ;;  %v1076_v4 = vpack.c.bf16 %v1748_v60, %v1739_v56  ;;  %v1078_v12 = vpack.c.bf16 %v1762_v3, %v1759_v0  ;;  %v1272_v13 = vpack.i.bf16 %v1704_v41, %v1693_v37  ;;  %v1776_v14 = vld [vmem:[%s1611_s23 + $0x40] sm:$0xff]  ;;  %v1782_v17 = vld [vmem:[%s1611_s23 + $0x48] sm:$0xff]  ;;  %v1789_v23 = vld [vmem:[%s1611_s23 + $0xd0] sm:$0xff]  ;;  %v1162_v35 = vpack.i.bf16 %v1696_v38, %v1687_v34 }
  0x4e   : > { %v241_v59 = vadd.f32 %v240_v50, %v1736_v55  ;;  %1041 = vmatpush3.bf16.msra.mxu0 %v1040_v45  ;;  %v1779_v16 = vld [vmem:[%s1611_s23 + $0x140] sm:$0xff]  ;;  %v1786_v20 = vld [vmem:[%s1611_s23 + $0x148] sm:$0xff]  ;;  %v1792_v25 = vld [vmem:[%s1611_s23 + $0xd8] sm:$0xff]  ;;  %v1048_v26 = vpack.c.bf16 %v1782_v17, %v1776_v14  ;;  %v1274_v40 = vpack.i.bf16 %v1708_v43, %v1699_v39 }
  0x4f   : > { %1269 = vxpose.xlu1.b32.cont [3/16] %v1268_v36, 128  ;;  %1073 = vmatpush3.bf16.msra.mxu1 %v1072_v48  ;;  %v1797_v28 = vld [vmem:[%s1611_s23 + $0x1d0] sm:$0xff]  ;;  %v1800_v29 = vld [vmem:[%s1611_s23 + $0x1d8] sm:$0xff]  ;;  %v1080_v30 = vpack.c.bf16 %v1786_v20, %v1779_v16  ;;  %v1050_v31 = vpack.c.bf16 %v1792_v25, %v1789_v23  ;;  %v1827_v50 = vld [vmem:[%s1611_s23 + $0xe0] sm:$0xff] }
  0x50   : > { %1043 = vmatprep.subr.bf16.mxu0 %v1042_v53  ;;  %v242_v11 = vadd.f32 %v241_v59, %v1742_v57  ;;  %1075 = vmatprep.subr.bf16.mxu1 %v1074_v58  ;;  %v1082_v37 = vpack.c.bf16 %v1800_v29, %v1797_v28  ;;  %v1814_v42 = vld [vmem:[%s1611_s23 + $0x50] sm:$0xff]  ;;  %v1820_v45 = vld [vmem:[%s1611_s23 + $0x58] sm:$0xff]  ;;  %v1830_v53 = vld [vmem:[%s1611_s23 + $0xe8] sm:$0xff] }
  0x51   : > { %1159 = vxpose.xlu0.b32.cont [4/16] %v1158_v49, 128  ;;  %v1817_v44 = vld [vmem:[%s1611_s23 + $0x150] sm:$0xff]  ;;  %v1824_v49 = vld [vmem:[%s1611_s23 + $0x158] sm:$0xff]  ;;  %v1052_v39 = vpack.c.bf16 %v1820_v45, %v1814_v42  ;;  %v1838_v58 = vld [vmem:[%s1611_s23 + $0x1e8] sm:$0xff] }
  0x52   : > { %v243_v18 = vadd.f32 %v242_v11, %v1776_v14  ;;  %1045 = vmatpush3.bf16.msra.mxu0 %v1044_v63  ;;  %v1084_v59 = vpack.c.bf16 %v1824_v49, %v1817_v44  ;;  %v1054_v63 = vpack.c.bf16 %v1830_v53, %v1827_v50  ;;  %v1276_v11 = vpack.i.bf16 %v1739_v56, %v1736_v55  ;;  %v186_v38 = vld [vmem:[%s1611_s23 + $0x78] sm:$0xff]  ;;  %v1892_v33 = vld [vmem:[%s1611_s23 + $0x170] sm:$0xff] }
  0x53   : > { %1271 = vxpose.xlu1.b32.cont [4/16] %v1270_v54, 128  ;;  %1077 = vmatpush3.bf16.msra.mxu1 %v1076_v4  ;;  %v1835_v54 = vld [vmem:[%s1611_s23 + $0x1e0] sm:$0xff]  ;;  %v1164_v4 = vpack.i.bf16 %v1726_v51, %v1715_v46  ;;  %v1895_v19 = vld [vmem:[%s1611_s23 + $0x178] sm:$0xff] }
  0x54   : > { %1047 = vmatprep.subr.bf16.mxu0 %v1046_v8  ;;  %v244_v36 = vadd.f32 %v243_v18, %v1782_v17  ;;  %1079 = vmatprep.subr.bf16.mxu1 %v1078_v12  ;;  %v1852_v12 = vld [vmem:[%s1611_s23 + $0x60] sm:$0xff]  ;;  %v1858_v18 = vld [vmem:[%s1611_s23 + $0x68] sm:$0xff] }
  0x55   : > { %1161 = vxpose.xlu0.b32.cont [5/16] %v1160_v9, 128  ;;  %v1086_v9 = vpack.c.bf16 %v1838_v58, %v1835_v54  ;;  %v1056_v55 = vpack.c.bf16 %v1858_v18, %v1852_v12 }
  0x56   : > { %v245_v48 = vadd.f32 %v244_v36, %v1814_v42  ;;  %1049 = vmatpush3.bf16.msra.mxu0 %v1048_v26  ;;  %v1873_v36 = vld [vmem:[%s1611_s23 + $0x1f0] sm:$0xff] }
  0x57   : > { %1273 = vxpose.xlu1.b32.cont [5/16] %v1272_v13, 128  ;;  %1081 = vmatpush3.bf16.msra.mxu1 %v1080_v30  ;;  %v1855_v13 = vld [vmem:[%s1611_s23 + $0x160] sm:$0xff]  ;;  %v1862_v30 = vld [vmem:[%s1611_s23 + $0x168] sm:$0xff] }
  0x58   : > { %1051 = vmatprep.subr.bf16.mxu0 %v1050_v31  ;;  %v246_v8 = vadd.f32 %v245_v48, %v1820_v45  ;;  %1083 = vmatprep.subr.bf16.mxu1 %v1082_v37  ;;  %v1865_v31 = vld [vmem:[%s1611_s23 + $0xf0] sm:$0xff]  ;;  %v1876_v37 = vld [vmem:[%s1611_s23 + $0x1f8] sm:$0xff] }
  0x59   : > { %1163 = vxpose.xlu0.b32.cont [6/16] %v1162_v35, 128  ;;  %v1868_v35 = vld [vmem:[%s1611_s23 + $0xf8] sm:$0xff]  ;;  %v1090_v51 = vpack.c.bf16 %v1876_v37, %v1873_v36 }
  0x5a   : > { %v247_v26 = vadd.f32 %v246_v8, %v1852_v12  ;;  %1053 = vmatpush3.bf16.msra.mxu0 %v1052_v39  ;;  %v1058_v48 = vpack.c.bf16 %v1868_v35, %v1865_v31  ;;  %v1166_v39 = vpack.i.bf16 %v1729_v52, %v1718_v47 }
  0x5b   : > { %1275 = vxpose.xlu1.b32.cont [6/16] %v1274_v40, 128  ;;  %1085 = vmatpush3.bf16.msra.mxu1 %v1084_v59  ;;  %v1088_v40 = vpack.c.bf16 %v1862_v30, %v1855_v13  ;;  %v1278_v59 = vpack.i.bf16 %v1748_v60, %v1742_v57  ;;  %v1280_v57 = vpack.i.bf16 %v1779_v16, %v1776_v14 }
  0x5c   : > { %1055 = vmatprep.subr.bf16.mxu0 %v1054_v63  ;;  %v248_v8 = vadd.f32 %v247_v26, %v1858_v18  ;;  %1087 = vmatprep.subr.bf16.mxu1 %v1086_v9  ;;  %v185_v63 = vld [vmem:[%s1611_s23 + $0x70] sm:$0xff]  ;;  %v1092_v9 = vpack.c.bf16 %v1895_v19, %v1892_v33  ;;  %v1284_v14 = vpack.i.bf16 %v1817_v44, %v1814_v42 }
  0x5d   : > { %1165 = vxpose.xlu0.b32.cont [7/16] %v1164_v4, 128  ;;  %v1060_v4 = vpack.c.bf16 %v186_v38, %v185_v63 }
  0x5e   : > { %v249_v24 = vadd.f32 %v248_v8, %v185_v63  ;;  %1057 = vmatpush3.bf16.msra.mxu0 %v1056_v55  ;;  %v1170_v55 = vpack.i.bf16 %v1762_v3, %v1754_v62 }
  0x5f   : > { %1277 = vxpose.xlu1.b32.cont [7/16] %v1276_v11, 128  ;;  %1089 = vmatpush3.bf16.msra.mxu1 %v1088_v40  ;;  %v1168_v11 = vpack.i.bf16 %v1759_v0, %v1751_v61 }
  0x60   : > { %1059 = vmatprep.subr.bf16.mxu0 %v1058_v48  ;;  %v250_v26 = vadd.f32 %v249_v24, %v186_v38  ;;  %1091 = vmatprep.subr.bf16.mxu1 %v1090_v51  ;;  %v1282_v48 = vpack.i.bf16 %v1786_v20, %v1782_v17  ;;  %v1172_v51 = vpack.i.bf16 %v1797_v28, %v1789_v23 }
  0x61   : > { %1167 = vxpose.xlu0.b32.cont [8/16] %v1166_v39, 128 }
  0x62   : > { %v251_v8 = vadd.f32 %v250_v26, %v1619_v1  ;;  %1061 = vmatpush3.bf16.msra.mxu0 %v1060_v4 }
  0x63   : > { %1279 = vxpose.xlu1.b32.cont [8/16] %v1278_v59, 128  ;;  %1093 = vmatpush3.bf16.msra.mxu1 %v1092_v9 }
  0x64   : > { %v252_v40 = vadd.f32 %v251_v8, %v1631_v6  ;;  %v1174_v6 = vpack.i.bf16 %v1800_v29, %v1792_v25 }
  0x65   : > { %1169 = vxpose.xlu0.b32.cont [9/16] %v1168_v11, 128 }
  0x66   : > { %v253_v24 = vadd.f32 %v252_v40, %v1648_v15  ;;  %v1286_v15 = vpack.i.bf16 %v1824_v49, %v1820_v45 }
  0x67   : > { %1281 = vxpose.xlu1.b32.cont [9/16] %v1280_v57, 128 }
  0x68   : > { %v254_v1 = vadd.f32 %v253_v24, %v1658_v21  ;;  %v1176_v21 = vpack.i.bf16 %v1835_v54, %v1827_v50 }
  0x69   : > { %1171 = vxpose.xlu0.b32.cont [10/16] %v1170_v55, 128 }
  0x6a   : > { %v255_v39 = vadd.f32 %v254_v1, %v1681_v32  ;;  %v1288_v32 = vpack.i.bf16 %v1855_v13, %v1852_v12 }
  0x6b   : > { %1283 = vxpose.xlu1.b32.cont [10/16] %v1282_v48, 128 }
  0x6c   : > { %v256_v17 = vadd.f32 %v255_v39, %v1687_v34  ;;  %v1178_v34 = vpack.i.bf16 %v1838_v58, %v1830_v53 }
  0x6d   : > { %1173 = vxpose.xlu0.b32.cont [11/16] %v1172_v51, 128 }
  0x6e   : > { %v257_v59 = vadd.f32 %v256_v17, %v1715_v46  ;;  %v1290_v46 = vpack.i.bf16 %v1862_v30, %v1858_v18 }
  0x6f   : > { %1285 = vxpose.xlu1.b32.cont [11/16] %v1284_v14, 128 }
  0x70   : > { %v258_v42 = vadd.f32 %v257_v59, %v1718_v47  ;;  %v1180_v47 = vpack.i.bf16 %v1873_v36, %v1865_v31 }
  0x71   : > { %1175 = vxpose.xlu0.b32.cont [12/16] %v1174_v6, 128 }
  0x72   : > { %v259_v4 = vadd.f32 %v258_v42, %v1751_v61  ;;  %v1292_v61 = vpack.i.bf16 %v1892_v33, %v185_v63 }
  0x73   : > { %1287 = vxpose.xlu1.b32.cont [12/16] %v1286_v15, 128 }
  0x74   : > { %v260_v45 = vadd.f32 %v259_v4, %v1754_v62  ;;  %v1182_v62 = vpack.i.bf16 %v1876_v37, %v1868_v35 }
  0x75   : > { %1177 = vxpose.xlu0.b32.cont [13/16] %v1176_v21, 128 }
  0x76   : > { %v261_v9 = vadd.f32 %v260_v45, %v1789_v23  ;;  %v1294_v23 = vpack.i.bf16 %v1895_v19, %v186_v38 }
  0x77   : > { %1289 = vxpose.xlu1.b32.cont [13/16] %v1288_v32, 128 }
  0x78   : > { %v262_v12 = vadd.f32 %v261_v9, %v1792_v25 }
  0x79   : > { %1179 = vxpose.xlu0.b32.cont [14/16] %v1178_v34, 128 }
  0x7a   : > { %v263_v11 = vadd.f32 %v262_v12, %v1827_v50 }
  0x7b   : > { %1291 = vxpose.xlu1.b32.cont [14/16] %v1290_v46, 128 }
  0x7c   : > { %v264_v26 = vadd.f32 %v263_v11, %v1830_v53 }
  0x7d   : > { %1181 = vxpose.xlu0.b32.cont [15/16] %v1180_v47, 128 }
  0x7e   : > { %v265_v18 = vadd.f32 %v264_v26, %v1865_v31 }
  0x7f   : > { %1293 = vxpose.xlu1.b32.cont [15/16] %v1292_v61, 128 }
  0x80   : > { %v266_v57 = vadd.f32 %v265_v18, %v1868_v35 }
  0x81   : > { %1183 = vxpose.xlu0.b32.end [16/16] %v1182_v62, 128 }
  0x82   : > { %v267_v25 = vadd.f32 %v266_v57, %v1628_v5 }
  0x83   : > { %1295 = vxpose.xlu1.b32.end [16/16] %v1294_v23, 128 }
  0x84   : > { %v1947_v63 = vadd.f32 %v267_v25, %v1639_v10 }
  0xc5   : > { %v1184_v50 = vpop.trf.xlu0 }
  0xc6   : > { %v1185_v55 = vunpack.i.l.bf16 %v1184_v50  ;;  %v1188_v40 = vunpack.i.h.bf16 %v1184_v50 }
  0xc7   : > { %v1296_v8 = vpop.trf.xlu1 }
  0xc8   : > { %v1297_v48 = vunpack.i.l.bf16 %v1296_v8  ;;  %v1300_v53 = vunpack.i.h.bf16 %v1296_v8  ;;  %515 = vmatprep.mubr.f32.mxu0 %v1185_v55  ;;  %660 = vmatprep.mubr.f32.mxu1 %v1188_v40 }
  0xc9   : > { %v1189_v38 = vpop.trf.xlu0 }
  0xca   : > { %516 = vmatmul.mubr.f32.vlgmr.msra.gmra.mrb[0].mxu0 %v1297_v48  ;;  %661 = vmatmul.mubr.f32.vlgmr.msra.gmra.mrb[0].mxu1 %v1300_v53  ;;  %v1190_v24 = vunpack.i.l.bf16 %v1189_v38  ;;  %v1193_v35 = vunpack.i.h.bf16 %v1189_v38 }
  0xcb   : > { %v1301_v31 = vpop.trf.xlu1 }
  0xcc   : > { %v1302_v51 = vunpack.i.l.bf16 %v1301_v31  ;;  %v1305_v1 = vunpack.i.h.bf16 %v1301_v31  ;;  %520 = vmatprep.mubr.f32.mxu0 %v1190_v24  ;;  %665 = vmatprep.mubr.f32.mxu1 %v1193_v35 }
  0xcd   : > { %v1194_v5 = vpop.trf.xlu0 }
  0xce   : > { %521 = vmatmul.mubr.f32.gmra.mrb[2].mxu0 %v1302_v51  ;;  %666 = vmatmul.mubr.f32.gmra.mrb[2].mxu1 %v1305_v1  ;;  %v1195_v14 = vunpack.i.l.bf16 %v1194_v5  ;;  %v1198_v39 = vunpack.i.h.bf16 %v1194_v5 }
  0xcf   : > { %v1306_v10 = vpop.trf.xlu1 }
  0xd0   : > { %v1307_v6 = vunpack.i.l.bf16 %v1306_v10  ;;  %v1310_v17 = vunpack.i.h.bf16 %v1306_v10  ;;  %525 = vmatprep.mubr.f32.mxu0 %v1195_v14  ;;  %670 = vmatprep.mubr.f32.mxu1 %v1198_v39 }
  0xd1   : > { %v1199_v15 = vpop.trf.xlu0 }
  0xd2   : > { %526 = vmatmul.mubr.f32.gmra.mrb[4].mxu0 %v1307_v6  ;;  %671 = vmatmul.mubr.f32.gmra.mrb[4].mxu1 %v1310_v17  ;;  %v1200_v21 = vunpack.i.l.bf16 %v1199_v15  ;;  %v1203_v42 = vunpack.i.h.bf16 %v1199_v15  ;;  %v269_v6 = vadd.f32 %v1947_v63, %v1661_v22 }
  0xd3   : > { %v1311_v59 = vpop.trf.xlu1 }
  0xd4   : > { %v1312_v32 = vunpack.i.l.bf16 %v1311_v59  ;;  %v1315_v4 = vunpack.i.h.bf16 %v1311_v59  ;;  %530 = vmatprep.mubr.f32.mxu0 %v1200_v21  ;;  %675 = vmatprep.mubr.f32.mxu1 %v1203_v42 }
  0xd5   : > { %v1204_v34 = vpop.trf.xlu0 }
  0xd6   : > { %531 = vmatmul.mubr.f32.gmra.mrb[6].mxu0 %v1312_v32  ;;  %676 = vmatmul.mubr.f32.gmra.mrb[6].mxu1 %v1315_v4  ;;  %v1205_v46 = vunpack.i.l.bf16 %v1204_v34  ;;  %v1208_v9 = vunpack.i.h.bf16 %v1204_v34  ;;  %v270_v4 = vadd.f32 %v269_v6, %v1672_v27 }
  0xd7   : > { %v1316_v45 = vpop.trf.xlu1 }
  0xd8   : > { %v1317_v47 = vunpack.i.l.bf16 %v1316_v45  ;;  %v1320_v12 = vunpack.i.h.bf16 %v1316_v45  ;;  %535 = vmatprep.mubr.f32.mxu0 %v1205_v46  ;;  %680 = vmatprep.mubr.f32.mxu1 %v1208_v9 }
  0xd9   : > { %v1209_v61 = vpop.trf.xlu0 }
  0xda   : > { %536 = vmatmul.mubr.f32.gmra.mrb[8].mxu0 %v1317_v47  ;;  %681 = vmatmul.mubr.f32.gmra.mrb[8].mxu1 %v1320_v12  ;;  %v1210_v62 = vunpack.i.l.bf16 %v1209_v61  ;;  %v1213_v26 = vunpack.i.h.bf16 %v1209_v61  ;;  %v271_v47 = vadd.f32 %v270_v4, %v1704_v41 }
  0xdb   : > { %v1321_v11 = vpop.trf.xlu1 }
  0xdc   : > { %v1322_v23 = vunpack.i.l.bf16 %v1321_v11  ;;  %v1325_v18 = vunpack.i.h.bf16 %v1321_v11  ;;  %540 = vmatprep.mubr.f32.mxu0 %v1210_v62  ;;  %685 = vmatprep.mubr.f32.mxu1 %v1213_v26 }
  0xdd   : > { %v1214_v57 = vpop.trf.xlu0 }
  0xde   : > { %541 = vmatmul.mubr.f32.gmra.mrb[10].mxu0 %v1322_v23  ;;  %686 = vmatmul.mubr.f32.gmra.mrb[10].mxu1 %v1325_v18  ;;  %v1215_v50 = vunpack.i.l.bf16 %v1214_v57  ;;  %v1218_v8 = vunpack.i.h.bf16 %v1214_v57  ;;  %v272_v23 = vadd.f32 %v271_v47, %v1708_v43 }
  0xdf   : > { %v1326_v25 = vpop.trf.xlu1 }
  0xe0   : > { %v1327_v55 = vunpack.i.l.bf16 %v1326_v25  ;;  %v1330_v40 = vunpack.i.h.bf16 %v1326_v25  ;;  %545 = vmatprep.mubr.f32.mxu0 %v1215_v50  ;;  %690 = vmatprep.mubr.f32.mxu1 %v1218_v8 }
  0xe1   : > { %v1219_v48 = vpop.trf.xlu0 }
  0xe2   : > { %546 = vmatmul.mubr.f32.gmra.mrb[12].mxu0 %v1327_v55  ;;  %691 = vmatmul.mubr.f32.gmra.mrb[12].mxu1 %v1330_v40  ;;  %v1220_v38 = vunpack.i.l.bf16 %v1219_v48  ;;  %v1223_v31 = vunpack.i.h.bf16 %v1219_v48  ;;  %v273_v55 = vadd.f32 %v272_v23, %v1739_v56 }
  0xe3   : > { %v1331_v53 = vpop.trf.xlu1 }
  0xe4   : > { %v1332_v24 = vunpack.i.l.bf16 %v1331_v53  ;;  %v1335_v35 = vunpack.i.h.bf16 %v1331_v53  ;;  %550 = vmatprep.mubr.f32.mxu0 %v1220_v38  ;;  %695 = vmatprep.mubr.f32.mxu1 %v1223_v31 }
  0xe5   : > { %v1224_v51 = vpop.trf.xlu0 }
  0xe6   : > { %551 = vmatmul.mubr.f32.gmra.mrb[14].mxu0 %v1332_v24  ;;  %696 = vmatmul.mubr.f32.gmra.mrb[14].mxu1 %v1335_v35  ;;  %v1225_v5 = vunpack.i.l.bf16 %v1224_v51  ;;  %v1228_v10 = vunpack.i.h.bf16 %v1224_v51  ;;  %v274_v24 = vadd.f32 %v273_v55, %v1748_v60 }
  0xe7   : > { %v1336_v1 = vpop.trf.xlu1 }
  0xe8   : > { %v1337_v14 = vunpack.i.l.bf16 %v1336_v1  ;;  %v1340_v39 = vunpack.i.h.bf16 %v1336_v1  ;;  %555 = vmatprep.mubr.f32.mxu0 %v1225_v5  ;;  %700 = vmatprep.mubr.f32.mxu1 %v1228_v10 }
  0xe9   : > { %v1229_v17 = vpop.trf.xlu0 }
  0xea   : > { %556 = vmatmul.mubr.f32.gmra.mrb[16].mxu0 %v1337_v14  ;;  %701 = vmatmul.mubr.f32.gmra.mrb[16].mxu1 %v1340_v39  ;;  %v1230_v59 = vunpack.i.l.bf16 %v1229_v17  ;;  %v1233_v21 = vunpack.i.h.bf16 %v1229_v17  ;;  %v275_v14 = vadd.f32 %v274_v24, %v1779_v16 }
  0xeb   : > { %v1341_v15 = vpop.trf.xlu1 }
  0xec   : > { %v1342_v42 = vunpack.i.l.bf16 %v1341_v15  ;;  %v1345_v32 = vunpack.i.h.bf16 %v1341_v15  ;;  %560 = vmatprep.mubr.f32.mxu0 %v1230_v59  ;;  %705 = vmatprep.mubr.f32.mxu1 %v1233_v21  ;;  %v276_v21 = vadd.f32 %v275_v14, %v1786_v20 }
  0xed   : > { %v1234_v34 = vpop.trf.xlu0 }
  0xee   : > { %561 = vmatmul.mubr.f32.gmra.mrb[18].mxu0 %v1342_v42  ;;  %706 = vmatmul.mubr.f32.gmra.mrb[18].mxu1 %v1345_v32  ;;  %v1235_v46 = vunpack.i.l.bf16 %v1234_v34  ;;  %v1238_v22 = vunpack.i.h.bf16 %v1234_v34  ;;  %v277_v42 = vadd.f32 %v276_v21, %v1817_v44 }
  0xef   : > { %v1346_v45 = vpop.trf.xlu1 }
  0xf0   : > { %v1347_v63 = vunpack.i.l.bf16 %v1346_v45  ;;  %v1350_v9 = vunpack.i.h.bf16 %v1346_v45  ;;  %565 = vmatprep.mubr.f32.mxu0 %v1235_v46  ;;  %710 = vmatprep.mubr.f32.mxu1 %v1238_v22  ;;  %v278_v16 = vadd.f32 %v277_v42, %v1824_v49  ;;  %v2054_v22 = vld [vmem:[#allocation11_spill] sm:$0xff] }
  0xf1   : > { %v1239_v12 = vpop.trf.xlu0 }
  0xf2   : > { %566 = vmatmul.mubr.f32.gmra.mrb[20].mxu0 %v1347_v63  ;;  %711 = vmatmul.mubr.f32.gmra.mrb[20].mxu1 %v1350_v9  ;;  %v1240_v11 = vunpack.i.l.bf16 %v1239_v12  ;;  %v1243_v27 = vunpack.i.h.bf16 %v1239_v12  ;;  %v279_v32 = vadd.f32 %v278_v16, %v1855_v13  ;;  %v2055_v9 = vld [vmem:[#allocation12_spill] sm:$0xff]  ;;  %v2056_v12 = vld [vmem:[#allocation13_spill] sm:$0xff] }
  0xf3   : > { %v1351_v61 = vpop.trf.xlu1 }
  0xf4   : > { %v1352_v62 = vunpack.i.l.bf16 %v1351_v61  ;;  %v1355_v26 = vunpack.i.h.bf16 %v1351_v61  ;;  %570 = vmatprep.mubr.f32.mxu0 %v1240_v11  ;;  %715 = vmatprep.mubr.f32.mxu1 %v1243_v27  ;;  %v280_v4 = vadd.f32 %v279_v32, %v1862_v30  ;;  %v2057_v61 = vld [vmem:[#allocation14_spill] sm:$0xff]  ;;  %v2058_v11 = vld [vmem:[#allocation15_spill] sm:$0xff] }
  0xf5   : > { %v1244_v18 = vpop.trf.xlu0 }
  0xf6   : > { %571 = vmatmul.mubr.f32.gmra.mrb[22].mxu0 %v1352_v62  ;;  %716 = vmatmul.mubr.f32.gmra.mrb[22].mxu1 %v1355_v26  ;;  %v1245_v25 = vunpack.i.l.bf16 %v1244_v18  ;;  %v1248_v41 = vunpack.i.h.bf16 %v1244_v18  ;;  %v281_v34 = vadd.f32 %v280_v4, %v1892_v33 }
  0xf7   : > { %v1356_v57 = vpop.trf.xlu1 }
  0xf8   : > { %v1357_v50 = vunpack.i.l.bf16 %v1356_v57  ;;  %v1360_v8 = vunpack.i.h.bf16 %v1356_v57  ;;  %575 = vmatprep.mubr.f32.mxu0 %v1245_v25  ;;  %720 = vmatprep.mubr.f32.mxu1 %v1248_v41  ;;  %v282_v45 = vadd.f32 %v281_v34, %v1895_v19 }
  0xf9   : > { %v1249_v40 = vpop.trf.xlu0 }
  0xfa   : > { %576 = vmatmul.mubr.f32.gmra.mrb[24].mxu0 %v1357_v50  ;;  %721 = vmatmul.mubr.f32.gmra.mrb[24].mxu1 %v1360_v8  ;;  %v1250_v53 = vunpack.i.l.bf16 %v1249_v40  ;;  %v1253_v43 = vunpack.i.h.bf16 %v1249_v40  ;;  %v283_v46 = vadd.f32 %v282_v45, %v1622_v2 }
  0xfb   : > { %v1361_v48 = vpop.trf.xlu1 }
  0xfc   : > { %v1362_v38 = vunpack.i.l.bf16 %v1361_v48  ;;  %v1365_v31 = vunpack.i.h.bf16 %v1361_v48  ;;  %580 = vmatprep.mubr.f32.mxu0 %v1250_v53  ;;  %725 = vmatprep.mubr.f32.mxu1 %v1253_v43  ;;  %v284_v20 = vadd.f32 %v283_v46, %v1634_v7 }
  0xfd   : > { %v1254_v35 = vpop.trf.xlu0 }
  0xfe   : > { %581 = vmatmul.mubr.f32.gmra.mrb[26].mxu0 %v1362_v38  ;;  %726 = vmatmul.mubr.f32.gmra.mrb[26].mxu1 %v1365_v31  ;;  %v1255_v1 = vunpack.i.l.bf16 %v1254_v35  ;;  %v1258_v56 = vunpack.i.h.bf16 %v1254_v35  ;;  %v285_v63 = vadd.f32 %v284_v20, %v2054_v22 }
  0xff   : > { %v1366_v51 = vpop.trf.xlu1 }
 0x100   : > { %v1367_v5 = vunpack.i.l.bf16 %v1366_v51  ;;  %v1370_v10 = vunpack.i.h.bf16 %v1366_v51  ;;  %585 = vmatprep.mubr.f32.mxu0 %v1255_v1  ;;  %730 = vmatprep.mubr.f32.mxu1 %v1258_v56  ;;  %v286_v47 = vadd.f32 %v285_v63, %v2055_v9 }
 0x101   : > { %v1259_v39 = vpop.trf.xlu0 }
 0x102   : > { %586 = vmatmul.mubr.f32.gmra.mrb[28].mxu0 %v1367_v5  ;;  %731 = vmatmul.mubr.f32.gmra.mrb[28].mxu1 %v1370_v10  ;;  %v1263_v6 = vunpack.i.h.bf16 %v1259_v39  ;;  %v1260_v17 = vunpack.i.l.bf16 %v1259_v39  ;;  %v287_v44 = vadd.f32 %v286_v47, %v2056_v12 }
 0x103   : > { %v1371_v60 = vpop.trf.xlu1 }
 0x104   : > { %v1375_v15 = vunpack.i.h.bf16 %v1371_v60  ;;  %v1372_v59 = vunpack.i.l.bf16 %v1371_v60  ;;  %590 = vmatprep.mubr.f32.mxu0 %v1260_v17  ;;  %735 = vmatprep.mubr.f32.mxu1 %v1263_v6  ;;  %v288_v49 = vadd.f32 %v287_v44, %v2057_v61 }
 0x106   : > { %591 = vmatmul.mubr.f32.gmra.mrb[30].mxu0 %v1372_v59  ;;  %736 = vmatmul.mubr.f32.gmra.mrb[30].mxu1 %v1375_v15  ;;  %v289_v13 = vadd.f32 %v288_v49, %v2058_v11 }
 0x108   : > { %v290_v30 = vadd.f32 %v289_v13, %v1729_v52 }
 0x10a   : > { %v291_v33 = vadd.f32 %v290_v30, %v1759_v0 }
 0x10c   : > { %v292_v19 = vadd.f32 %v291_v33, %v1762_v3  ;;  %v235_v3 = vld [vmem:[#allocation5] sm:$0x1] }
 0x10e   : > { %v293_v2 = vadd.f32 %v292_v19, %v1797_v28 }
 0x110   : > { %v294_v7 = vadd.f32 %v293_v2, %v1800_v29 }
 0x112   : > { %v295_v27 = vadd.f32 %v294_v7, %v1835_v54 }
 0x114   : > { %v296_v62 = vadd.f32 %v295_v27, %v1838_v58 }
 0x116   : > { %v297_v26 = vadd.f32 %v296_v62, %v1873_v36 }
 0x118   : > { %v298_v23 = vadd.f32 %v297_v26, %v1876_v37 }
 0x11a   : > { %v299_v18 = vrot.slane %v298_v23, 4 }
 0x11c   : > { %v300_v52 = vadd.f32 %v299_v18, %v298_v23 }
 0x11e   : > { %v301_v57 = vrot.slane %v300_v52, 2 }
 0x120   : > { %v302_v0 = vadd.f32 %v301_v57, %v300_v52 }
 0x122   : > { %v303_v25 = vrot.slane %v302_v0, 1 }
 0x124   : > { %v304_v41 = vadd.f32 %v303_v25, %v302_v0 }
 0x126   : > { %v305_v50 = vadd.f32 %v304_v41, %v235_v3 }
 0x128   : > { %306 = vst [vmem:[#allocation5] sm:$0x1] %v305_v50 }
 0x129   : > { %1419 = shalt.err (!%p1416_p0)
}
 0x12a   : > { %s1420_s28 = scalar_lea.hbm %s2039_s1, 16 }
 0x12b   : > { %p1421_p1 = scmp.ne.s32.totalorder %s2039_s1, %s1420_s28  ;;  %p1426_p13 = scmp.lt.u32.totalorder %s1420_s28, %s2039_s1 }
 0x12d   : > { %p1422_p2 = pnand %p1421_p1, %p1109_p7 }
 0x12f   : > { %p1423_p11 = pneg %p1422_p2 }
 0x131   : > { %p1428_p3 = pnand %p1426_p13, %p1423_p11 }
 0x133   : > { %1431 = shalt.err (!%p1428_p3)
}
 0x134   : > { %1097 = dma.vmem_to_hbm [thread:$0]  (%p1109_p7), %s781_s18, 16, %s2039_s1, [#allocation4]   ;;  %v307_v8 = vld [vmem:[#allocation6] sm:$0xff]  ;;  %v308_v35 = vld [vmem:[#allocation6 + $0x8] sm:$0xff]  ;;  %v309_v17 = vld [vmem:[#allocation6 + $0x10] sm:$0xff] }
 0x135   : > { %v310_v34 = vld [vmem:[#allocation6 + $0x18] sm:$0xff]  ;;  %v311_v44 = vld [vmem:[#allocation6 + $0x20] sm:$0xff]  ;;  %v312_v7 = vld [vmem:[#allocation6 + $0x28] sm:$0xff]  ;;  %s1507_s7 = smov [#allocation6]  }
 0x136   : > { %v313_v25 = vld [vmem:[#allocation6 + $0x30] sm:$0xff]  ;;  %s790_s8 = sshll.u32 %s1507_s7, 4  ;;  %s791_s8 = int_to_ptr.vmem [resolvable:$true] %s790_s8 }
 0x137   : > { %s1432_s9 = scalar_lea.vmem %s791_s8, 2048  ;;  %p1439_p5 = scmp.lt.s32.totalorder %s791_s8, %s791_s8 }
 0x138   : > { %p1433_p9 = scmp.ne.s32.totalorder %s791_s8, %s1432_s9  ;;  %p1440_p6 = scmp.lt.s32.totalorder %s1432_s9, %s1432_s9 }
 0x13a   : > { %p1434_p8 = pnand %p1433_p9, %p1109_p7  ;;  %p1441_p10 = por %p1440_p6, %p1439_p5 }
 0x13c   : > { %p1435_p4 = pneg %p1434_p8 }
 0x13e   : > { %p1442_p12 = pnand %p1441_p10, %p1435_p4 }
 0x19d   : > { %v902_v28 = vpop.f32.mrb[0].mxu0  ;;  %v982_v29 = vpop.f32.mrb[0].mxu1 }
 0x19e   : > { %v903_v54 = vpop.f32.mrb[1].mxu0  ;;  %v983_v58 = vpop.f32.mrb[1].mxu1 }
 0x19f   : > { %v904_v36 = vadd.f32 %v903_v54, %v902_v28  ;;  %v984_v37 = vadd.f32 %v983_v58, %v982_v29 }
 0x1a1   : > { %v663_v55 = vadd.f32 %v984_v37, %v904_v36  ;;  %v905_v40 = vpop.f32.mrb[2].mxu0  ;;  %v985_v48 = vpop.f32.mrb[2].mxu1  ;;  %v314_v37 = vld [vmem:[#allocation6 + $0x38] sm:$0xff] }
 0x1a2   : > { %v906_v53 = vpop.f32.mrb[3].mxu0  ;;  %v986_v43 = vpop.f32.mrb[3].mxu1 }
 0x1a3   : > { %v741_v38 = vadd.f32 %v663_v55, %v307_v8  ;;  %v907_v31 = vadd.f32 %v906_v53, %v905_v40  ;;  %v987_v24 = vadd.f32 %v986_v43, %v985_v48 }
 0x1a5   : > { %757 = vst [vmem:[#allocation6] sm:$0xff] %v741_v38  ;;  %v668_v51 = vadd.f32 %v987_v24, %v907_v31  ;;  %v908_v1 = vpop.f32.mrb[4].mxu0  ;;  %v988_v56 = vpop.f32.mrb[4].mxu1  ;;  %v315_v24 = vld [vmem:[#allocation6 + $0x40] sm:$0xff] }
 0x1a6   : > { %v909_v5 = vpop.f32.mrb[5].mxu0  ;;  %v989_v10 = vpop.f32.mrb[5].mxu1 }
 0x1a7   : > { %v742_v14 = vadd.f32 %v668_v51, %v308_v35  ;;  %v910_v39 = vadd.f32 %v909_v5, %v908_v1  ;;  %v990_v6 = vadd.f32 %v989_v10, %v988_v56 }
 0x1a9   : > { %758 = vst [vmem:[#allocation6 + $0x8] sm:$0xff] %v742_v14  ;;  %v673_v60 = vadd.f32 %v990_v6, %v910_v39  ;;  %v911_v15 = vpop.f32.mrb[6].mxu0  ;;  %v991_v59 = vpop.f32.mrb[6].mxu1  ;;  %v316_v6 = vld [vmem:[#allocation6 + $0x48] sm:$0xff] }
 0x1aa   : > { %v912_v21 = vpop.f32.mrb[7].mxu0  ;;  %v992_v42 = vpop.f32.mrb[7].mxu1 }
 0x1ab   : > { %v743_v16 = vadd.f32 %v673_v60, %v309_v17  ;;  %v913_v32 = vadd.f32 %v912_v21, %v911_v15  ;;  %v993_v4 = vadd.f32 %v992_v42, %v991_v59 }
 0x1ad   : > { %759 = vst [vmem:[#allocation6 + $0x10] sm:$0xff] %v743_v16  ;;  %v678_v45 = vadd.f32 %v993_v4, %v913_v32  ;;  %v914_v46 = vpop.f32.mrb[8].mxu0  ;;  %v994_v20 = vpop.f32.mrb[8].mxu1  ;;  %v317_v4 = vld [vmem:[#allocation6 + $0x50] sm:$0xff] }
 0x1ae   : > { %v915_v22 = vpop.f32.mrb[9].mxu0  ;;  %v995_v63 = vpop.f32.mrb[9].mxu1 }
 0x1af   : > { %v744_v9 = vadd.f32 %v678_v45, %v310_v34  ;;  %v916_v47 = vadd.f32 %v915_v22, %v914_v46  ;;  %v996_v12 = vadd.f32 %v995_v63, %v994_v20 }
 0x1b1   : > { %760 = vst [vmem:[#allocation6 + $0x18] sm:$0xff] %v744_v9  ;;  %v683_v61 = vadd.f32 %v996_v12, %v916_v47  ;;  %v917_v49 = vpop.f32.mrb[10].mxu0  ;;  %v997_v11 = vpop.f32.mrb[10].mxu1  ;;  %v318_v12 = vld [vmem:[#allocation6 + $0x58] sm:$0xff] }
 0x1b2   : > { %v918_v13 = vpop.f32.mrb[11].mxu0  ;;  %v998_v30 = vpop.f32.mrb[11].mxu1 }
 0x1b3   : > { %v745_v33 = vadd.f32 %v683_v61, %v311_v44  ;;  %v919_v19 = vadd.f32 %v918_v13, %v917_v49  ;;  %v999_v2 = vadd.f32 %v998_v30, %v997_v11 }
 0x1b5   : > { %761 = vst [vmem:[#allocation6 + $0x20] sm:$0xff] %v745_v33  ;;  %v688_v27 = vadd.f32 %v999_v2, %v919_v19  ;;  %v920_v62 = vpop.f32.mrb[12].mxu0  ;;  %v1000_v26 = vpop.f32.mrb[12].mxu1  ;;  %v319_v2 = vld [vmem:[#allocation6 + $0x60] sm:$0xff] }
 0x1b6   : > { %v921_v23 = vpop.f32.mrb[13].mxu0  ;;  %v1001_v18 = vpop.f32.mrb[13].mxu1 }
 0x1b7   : > { %v746_v52 = vadd.f32 %v688_v27, %v312_v7  ;;  %v922_v57 = vadd.f32 %v921_v23, %v920_v62  ;;  %v1002_v0 = vadd.f32 %v1001_v18, %v1000_v26 }
 0x1b9   : > { %762 = vst [vmem:[#allocation6 + $0x28] sm:$0xff] %v746_v52  ;;  %v693_v41 = vadd.f32 %v1002_v0, %v922_v57  ;;  %v923_v3 = vpop.f32.mrb[14].mxu0  ;;  %v1003_v50 = vpop.f32.mrb[14].mxu1  ;;  %v320_v0 = vld [vmem:[#allocation6 + $0x68] sm:$0xff] }
 0x1ba   : > { %v924_v28 = vpop.f32.mrb[15].mxu0  ;;  %v1004_v29 = vpop.f32.mrb[15].mxu1 }
 0x1bb   : > { %v747_v54 = vadd.f32 %v693_v41, %v313_v25  ;;  %v925_v58 = vadd.f32 %v924_v28, %v923_v3  ;;  %v1005_v36 = vadd.f32 %v1004_v29, %v1003_v50 }
 0x1bd   : > { %763 = vst [vmem:[#allocation6 + $0x30] sm:$0xff] %v747_v54  ;;  %v698_v8 = vadd.f32 %v1005_v36, %v925_v58  ;;  %v926_v55 = vpop.f32.mrb[16].mxu0  ;;  %v1006_v40 = vpop.f32.mrb[16].mxu1  ;;  %v321_v36 = vld [vmem:[#allocation6 + $0x70] sm:$0xff] }
 0x1be   : > { %v927_v48 = vpop.f32.mrb[17].mxu0  ;;  %v1007_v53 = vpop.f32.mrb[17].mxu1 }
 0x1bf   : > { %v748_v43 = vadd.f32 %v698_v8, %v314_v37  ;;  %v928_v38 = vadd.f32 %v927_v48, %v926_v55  ;;  %v1008_v31 = vadd.f32 %v1007_v53, %v1006_v40 }
 0x1c1   : > { %764 = vst [vmem:[#allocation6 + $0x38] sm:$0xff] %v748_v43  ;;  %v703_v35 = vadd.f32 %v1008_v31, %v928_v38  ;;  %v929_v51 = vpop.f32.mrb[18].mxu0  ;;  %v1009_v1 = vpop.f32.mrb[18].mxu1  ;;  %v322_v31 = vld [vmem:[#allocation6 + $0x78] sm:$0xff] }
 0x1c2   : > { %v930_v56 = vpop.f32.mrb[19].mxu0  ;;  %v1010_v5 = vpop.f32.mrb[19].mxu1 }
 0x1c3   : > { %v749_v10 = vadd.f32 %v703_v35, %v315_v24  ;;  %v931_v14 = vadd.f32 %v930_v56, %v929_v51  ;;  %v1011_v39 = vadd.f32 %v1010_v5, %v1009_v1 }
 0x1c5   : > { %765 = vst [vmem:[#allocation6 + $0x40] sm:$0xff] %v749_v10  ;;  %v708_v17 = vadd.f32 %v1011_v39, %v931_v14  ;;  %v932_v60 = vpop.f32.mrb[20].mxu0  ;;  %v1012_v15 = vpop.f32.mrb[20].mxu1 }
 0x1c6   : > { %v933_v59 = vpop.f32.mrb[21].mxu0  ;;  %v1013_v21 = vpop.f32.mrb[21].mxu1 }
 0x1c7   : > { %v750_v42 = vadd.f32 %v708_v17, %v316_v6  ;;  %v934_v16 = vadd.f32 %v933_v59, %v932_v60  ;;  %v1014_v32 = vadd.f32 %v1013_v21, %v1012_v15 }
 0x1c9   : > { %766 = vst [vmem:[#allocation6 + $0x48] sm:$0xff] %v750_v42  ;;  %v713_v34 = vadd.f32 %v1014_v32, %v934_v16  ;;  %v935_v45 = vpop.f32.mrb[22].mxu0  ;;  %v1015_v46 = vpop.f32.mrb[22].mxu1 }
 0x1ca   : > { %v936_v20 = vpop.f32.mrb[23].mxu0  ;;  %v1016_v22 = vpop.f32.mrb[23].mxu1 }
 0x1cb   : > { %v751_v63 = vadd.f32 %v713_v34, %v317_v4  ;;  %v937_v9 = vadd.f32 %v936_v20, %v935_v45  ;;  %v1017_v47 = vadd.f32 %v1016_v22, %v1015_v46 }
 0x1cd   : > { %767 = vst [vmem:[#allocation6 + $0x50] sm:$0xff] %v751_v63  ;;  %v718_v44 = vadd.f32 %v1017_v47, %v937_v9  ;;  %v938_v61 = vpop.f32.mrb[24].mxu0  ;;  %v1018_v49 = vpop.f32.mrb[24].mxu1 }
 0x1ce   : > { %v939_v11 = vpop.f32.mrb[25].mxu0  ;;  %v1019_v13 = vpop.f32.mrb[25].mxu1 }
 0x1cf   : > { %v752_v30 = vadd.f32 %v718_v44, %v318_v12  ;;  %v940_v33 = vadd.f32 %v939_v11, %v938_v61  ;;  %v1020_v19 = vadd.f32 %v1019_v13, %v1018_v49 }
 0x1d1   : > { %768 = vst [vmem:[#allocation6 + $0x58] sm:$0xff] %v752_v30  ;;  %v723_v7 = vadd.f32 %v1020_v19, %v940_v33  ;;  %v941_v27 = vpop.f32.mrb[26].mxu0  ;;  %v1021_v62 = vpop.f32.mrb[26].mxu1 }
 0x1d2   : > { %v942_v26 = vpop.f32.mrb[27].mxu0  ;;  %v1022_v23 = vpop.f32.mrb[27].mxu1 }
 0x1d3   : > { %v753_v18 = vadd.f32 %v723_v7, %v319_v2  ;;  %v943_v52 = vadd.f32 %v942_v26, %v941_v27  ;;  %v1023_v57 = vadd.f32 %v1022_v23, %v1021_v62 }
 0x1d5   : > { %769 = vst [vmem:[#allocation6 + $0x60] sm:$0xff] %v753_v18  ;;  %v728_v25 = vadd.f32 %v1023_v57, %v943_v52  ;;  %v944_v41 = vpop.f32.mrb[28].mxu0  ;;  %v1024_v3 = vpop.f32.mrb[28].mxu1 }
 0x1d6   : > { %v945_v50 = vpop.f32.mrb[29].mxu0  ;;  %v1025_v28 = vpop.f32.mrb[29].mxu1 }
 0x1d7   : > { %v754_v29 = vadd.f32 %v728_v25, %v320_v0  ;;  %v946_v54 = vadd.f32 %v945_v50, %v944_v41  ;;  %v1026_v58 = vadd.f32 %v1025_v28, %v1024_v3 }
 0x1d9   : > { %770 = vst [vmem:[#allocation6 + $0x68] sm:$0xff] %v754_v29  ;;  %v733_v37 = vadd.f32 %v1026_v58, %v946_v54  ;;  %v947_v8 = vpop.f32.mrb[30].mxu0  ;;  %v1027_v55 = vpop.f32.mrb[30].mxu1 }
 0x1da   : > { %v948_v40 = vpop.f32.mrb[31].mxu0  ;;  %v1028_v48 = vpop.f32.mrb[31].mxu1 }
 0x1db   : > { %v755_v53 = vadd.f32 %v733_v37, %v321_v36  ;;  %v949_v43 = vadd.f32 %v948_v40, %v947_v8  ;;  %v1029_v38 = vadd.f32 %v1028_v48, %v1027_v55 }
 0x1dd   : > { %771 = vst [vmem:[#allocation6 + $0x70] sm:$0xff] %v755_v53  ;;  %v738_v24 = vadd.f32 %v1029_v38, %v949_v43 }
 0x1df   : > { %v756_v35 = vadd.f32 %v738_v24, %v322_v31 }
 0x1e1   : > { %772 = vst [vmem:[#allocation6 + $0x78] sm:$0xff] %v756_v35 }
 0x1e2   : > { %1445 = shalt.err (!%p1442_p12)
}
 0x1e3   : > { %s1446_s19 = scalar_lea.hbm %s2040_s2, 2048 }
 0x1e4   : > { %p1447_p0 = scmp.ne.s32.totalorder %s2040_s2, %s1446_s19  ;;  %p1452_p11 = scmp.lt.u32.totalorder %s1446_s19, %s2040_s2 }
 0x1e6   : > { %p1448_p1 = pnand %p1447_p0, %p1109_p7 }
 0x1e8   : > { %p1449_p2 = pneg %p1448_p1 }
 0x1ea   : > { %p1454_p13 = pnand %p1452_p11, %p1449_p2 }
 0x1ec   : > { %1457 = shalt.err (!%p1454_p13)
}
 0x1ed   : > { %s1508_s12 = smov 128   ;;  %s1509_s18 = smov 8  }
 0x1ee   : > { %1099 = dma.vmem_to_hbm [thread:$0]  (%p1109_p7), %s791_s8, 2048, %s2040_s2, [#allocation7], %s1508_s12, %s1508_s12, %s1509_s18  }
 0x1ef   : > { %1479 = dma.done.wait (%p1109_p7), [#allocation4], 16  }
 0x1f0   : > { %1481 = vsyncadd (%p1109_p7), [#allocation4], 4294967280 }
 0x1f1   : > { %1483 = dma.done.wait (%p1109_p7), [#allocation7], 2048  }
 0x1f2   : > { %1485 = vsyncadd (%p1109_p7), [#allocation7], 4294965248 }
 0x1f3 PF: > { %p15_p3 = scmp.ge.s32.totalorder %s1547_s14, 6   ;;  %s2059_s9 = smov %s1492_s10 }
 0x1f4   : > { %s2060_s10 = smov %s1496_s11  ;;  %s2061_s11 = smov %s1557_s17 }
 0x1f5   : > { %s2062_s12 = smov %s1547_s14  ;;  %17 = sbr.rel (!%p15_p3) target bundleno = 5 (0x5), region = 73 }
 0x1fc   :  { %810 = vsyncpa [#allocation3], 1 }
 0x1fd   :  { %812 = vsyncpa [#allocation3 + $0x1], 1 }
 0x1fe   :  { %813 = vsyncpa [#allocation4], 1 }
 0x1ff   :  { %815 = vsyncpa [#allocation4 + $0x1], 1 }
 0x200   :  { %816 = vsyncpa [#allocation7], 1 }

</bundles_post_ra>
